<compile_context>
chip_gen: v7x
topology: tpu7x:2x2x1
jax: 0.10.0
libtpu: 0.0.40
codegen_flags: <defaults>
</compile_context>

<pallas_src>
import jax
import jax.numpy as jnp
from jax import lax
from jax.experimental import pallas as pl
from jax.experimental.pallas import tpu as pltpu
from functools import partial


def msa_kernel(zq_ref, zkv_ref, wq_ref, wk_ref, wv_ref, wout_ref, bout_ref, o_ref,
               *, num_head, dim_head):
    # zq_ref:   (1, tq, D)  bf16  query rows of the current batch element
    # zkv_ref:  (1, N,  D)  bf16  full sequence (for K/V) of the same element
    # wq_ref:   (D, H*Dh)   bf16  Q projection, softmax scale pre-folded
    # wk_ref:   (D, H*Dh)   bf16
    # wv_ref:   (D, H*Dh)   bf16
    # wout_ref: (H*Dh, D)   bf16
    # bout_ref: (1, D)      f32
    # o_ref:    (1, tq, D)  f32
    zq = zq_ref[0]                                     # (tq, D)
    zkv = zkv_ref[0]                                   # (N, D)

    # Projections: bf16 operands, f32 MXU accumulation, then downcast for the
    # attention matmuls.
    q = jnp.dot(zq, wq_ref[...],
                preferred_element_type=jnp.float32).astype(jnp.bfloat16)   # (tq, H*Dh)
    k = jnp.dot(zkv, wk_ref[...],
                preferred_element_type=jnp.float32).astype(jnp.bfloat16)   # (N,  H*Dh)
    v = jnp.dot(zkv, wv_ref[...],
                preferred_element_type=jnp.float32).astype(jnp.bfloat16)   # (N,  H*Dh)

    tq = zq.shape[0]
    D = o_ref.shape[-1]
    acc = jnp.zeros((tq, D), jnp.float32)

    # Small H: full unroll is fine. For large num_head switch this to a
    # lax.fori_loop over an (H, ., Dh) view to bound live ranges.
    for h in range(num_head):
        sl = slice(h * dim_head, (h + 1) * dim_head)
        q_h, k_h, v_h = q[:, sl], k[:, sl], v[:, sl]   # (tq, Dh), (N, Dh), (N, Dh)

        # Scores: contract the last (Dh) dims directly; scale already in W_q.
        s = lax.dot_general(q_h, k_h, (((1,), (1,)), ((), ())),
                            preferred_element_type=jnp.float32)            # (tq, N)

        # f32 softmax math; normalization deferred past p @ v and applied once
        # per row on the (tq, Dh) tile with an EUP reciprocal.
        m = jnp.max(s, axis=-1, keepdims=True)
        p = jnp.exp(s - m)
        denom = jnp.sum(p, axis=-1, keepdims=True)

        sa = jnp.dot(p.astype(jnp.bfloat16), v_h,
                     preferred_element_type=jnp.float32)                   # (tq, Dh)
        sa = sa * pl.reciprocal(denom, approx=True)

        # Accumulate through the matching W_out rows -- no lane concat.
        acc = acc + jnp.dot(sa.astype(jnp.bfloat16), wout_ref[sl, :],
                            preferred_element_type=jnp.float32)            # (tq, D)

    o_ref[0] = (acc + bout_ref[...]).astype(o_ref.dtype)


def _pick_tq(n):
    for t in (256, 128):
        if n % t == 0:
            return t
    return n  # small / odd sequence lengths: one tile covers the whole sequence


def multihead_self_attention(z, w_qkv, w_out, b_out, *, num_head, dim_head):
    """z: (B, N, D) float32. Returns (B, N, D) float32."""
    B, N, D = z.shape
    dim_inner = num_head * dim_head
    scale = float(dim_head) ** -0.5

    # Fold the softmax scale into W_q (trace-time, zero in-kernel cost), split
    # the fused QKV weight so the kernel never lane-slices the wide weight, and
    # cast matmul operands to bf16 (halves weight/activation DMA bytes).
    w_q = (w_qkv[:, 0 * dim_inner:1 * dim_inner] * scale).astype(jnp.bfloat16)
    w_k = w_qkv[:, 1 * dim_inner:2 * dim_inner].astype(jnp.bfloat16)
    w_v = w_qkv[:, 2 * dim_inner:3 * dim_inner].astype(jnp.bfloat16)
    w_o = w_out.astype(jnp.bfloat16)
    b_o = b_out.astype(jnp.float32)
    z_bf = z.astype(jnp.bfloat16)

    tq = _pick_tq(N)
    nq = N // tq

    kernel = partial(msa_kernel, num_head=num_head, dim_head=dim_head)

    return pl.pallas_call(
        kernel,
        out_shape=jax.ShapeDtypeStruct((B, N, D), jnp.float32),
        grid_spec=pltpu.PrefetchScalarGridSpec(
            num_scalar_prefetch=0,
            grid=(B, nq),
            in_specs=[
                pl.BlockSpec((1, tq, D), lambda b, qi: (b, qi, 0)),   # query rows
                pl.BlockSpec((1, N, D), lambda b, qi: (b, 0, 0)),     # full seq for K/V
                pl.BlockSpec((D, dim_inner), lambda b, qi: (0, 0)),   # W_q (scaled)
                pl.BlockSpec((D, dim_inner), lambda b, qi: (0, 0)),   # W_k
                pl.BlockSpec((D, dim_inner), lambda b, qi: (0, 0)),   # W_v
                pl.BlockSpec((dim_inner, D), lambda b, qi: (0, 0)),   # W_out
                pl.BlockSpec((1, D), lambda b, qi: (0, 0)),           # b_out
            ],
            out_specs=pl.BlockSpec((1, tq, D), lambda b, qi: (b, qi, 0)),
        ),
        compiler_params=pltpu.CompilerParams(
            dimension_semantics=("parallel", "parallel"),
            vmem_limit_bytes=48 * 1024 * 1024,   # fits v7x's 64 MiB VMEM with headroom
        ),
    )(z_bf, z_bf, w_q, w_k, w_v, w_o, b_o)


def reference(z, w_qkv, w_out, b_out, *, num_head, dim_head):
    B, N, D = z.shape
    scale = float(dim_head) ** -0.5
    qkv = jnp.einsum("bnd,de->bne", z, w_qkv)
    q, k, v = jnp.split(qkv, 3, axis=-1)

    def to_heads(t):
        return t.reshape(B, N, num_head, dim_head).transpose(0, 2, 1, 3)

    q, k, v = to_heads(q), to_heads(k), to_heads(v)
    dots = jnp.einsum("bhid,bhjd->bhij", q, k) * scale
    attn = jax.nn.softmax(dots, axis=-1)
    sa = jnp.einsum("bhij,bhjd->bhid", attn, v)
    sa = sa.transpose(0, 2, 1, 3).reshape(B, N, num_head * dim_head)
    return jnp.einsum("bne,ed->bnd", sa, w_out) + b_out[0]


if __name__ == "__main__":
    # Small shapes consistent with the module: B=2, N=8, D=32, 4 heads of dim 8.
    B, N, D = 2, 8, 32
    num_head, dim_head = 4, 8
    dim_inner = num_head * dim_head

    key = jax.random.PRNGKey(0)
    kz, kq, kw, kb = jax.random.split(key, 4)

    z = jax.random.normal(kz, (B, N, D), dtype=jnp.float32)
    # Deterministic synthetic parameters (nn.Linear shapes, pre-transposed to (in, out)).
    w_qkv = jax.random.normal(kq, (D, 3 * dim_inner), dtype=jnp.float32) * 0.05
    w_out = jax.random.normal(kw, (dim_inner, D), dtype=jnp.float32) * 0.05
    b_out = jax.random.normal(kb, (1, D), dtype=jnp.float32) * 0.05
    # add_bias_qkv=False -> no qkv bias; Dropout(0.0) -> identity.

    out = multihead_self_attention(
        z, w_qkv, w_out, b_out, num_head=num_head, dim_head=dim_head)
    out = jax.block_until_ready(out)

    ref = reference(z, w_qkv, w_out, b_out, num_head=num_head, dim_head=dim_head)
    assert out.shape == (B, N, D)
    max_err = float(jnp.max(jnp.abs(out - ref)))
    # bf16 matmul operands + approximate EUP reciprocal -> looser tolerance.
    assert jnp.allclose(out, ref, atol=2e-2, rtol=2e-2), \
        f"mismatch vs reference (max abs err {max_err})"

    print("KERNEL_OK")
</pallas_src>

<mosaic_0001>
module attributes {stable_mosaic.version = 11 : i64} {
  func.func @msa_kernel(%arg0: i32, %arg1: i32, %arg2: memref<1x8x32xbf16, #tpu.memory_space<vmem>>, %arg3: memref<1x8x32xbf16, #tpu.memory_space<vmem>>, %arg4: memref<32x32xbf16, #tpu.memory_space<vmem>>, %arg5: memref<32x32xbf16, #tpu.memory_space<vmem>>, %arg6: memref<32x32xbf16, #tpu.memory_space<vmem>>, %arg7: memref<32x32xbf16, #tpu.memory_space<vmem>>, %arg8: memref<1x32xf32, #tpu.memory_space<vmem>>, %arg9: memref<1x8x32xf32, #tpu.memory_space<vmem>>) attributes {dimension_semantics = [#tpu.dimension_semantics<parallel>, #tpu.dimension_semantics<parallel>], iteration_bounds = array<i64: 2, 1>, scalar_prefetch = 0 : i64, scratch_operands = 0 : i64, tpu.core_type = #tpu.core_type<tc>, window_params = [{transform_indices = @transform_0, window_bounds = array<i64: 1, 8, 32>}, {transform_indices = @transform_1, window_bounds = array<i64: 1, 8, 32>}, {pipeline_mode = #tpu.pipeline_mode<synchronous>, transform_indices = @transform_2, window_bounds = array<i64: 32, 32>}, {pipeline_mode = #tpu.pipeline_mode<synchronous>, transform_indices = @transform_3, window_bounds = array<i64: 32, 32>}, {pipeline_mode = #tpu.pipeline_mode<synchronous>, transform_indices = @transform_4, window_bounds = array<i64: 32, 32>}, {pipeline_mode = #tpu.pipeline_mode<synchronous>, transform_indices = @transform_5, window_bounds = array<i64: 32, 32>}, {pipeline_mode = #tpu.pipeline_mode<synchronous>, transform_indices = @transform_6, window_bounds = array<i64: 1, 32>}, {transform_indices = @transform_7, window_bounds = array<i64: 1, 8, 32>}]} {
    %c0 = arith.constant 0 : index
    %c0_0 = arith.constant 0 : index
    %c0_1 = arith.constant 0 : index
    %0 = vector.load %arg2[%c0, %c0_0, %c0_1] : memref<1x8x32xbf16, #tpu.memory_space<vmem>>, vector<1x8x32xbf16>
    %1 = vector.shape_cast %0 : vector<1x8x32xbf16> to vector<8x32xbf16>
    %c0_2 = arith.constant 0 : index
    %c0_3 = arith.constant 0 : index
    %c0_4 = arith.constant 0 : index
    %2 = vector.load %arg3[%c0_2, %c0_3, %c0_4] : memref<1x8x32xbf16, #tpu.memory_space<vmem>>, vector<1x8x32xbf16>
    %3 = vector.shape_cast %2 : vector<1x8x32xbf16> to vector<8x32xbf16>
    %c0_5 = arith.constant 0 : index
    %c0_6 = arith.constant 0 : index
    %4 = vector.load %arg4[%c0_5, %c0_6] : memref<32x32xbf16, #tpu.memory_space<vmem>>, vector<32x32xbf16>
    %cst = arith.constant dense<0.000000e+00> : vector<8x32xf32>
    %5 = tpu.matmul %1, %4, %cst {dimension_numbers = #tpu.dot_dimension_numbers<[1], [0], [0], [1], [0, 0, 1, 1], [], []>} : vector<8x32xbf16>, vector<32x32xbf16>, vector<8x32xf32> -> vector<8x32xf32>
    %6 = arith.truncf %5 : vector<8x32xf32> to vector<8x32xbf16>
    %c0_7 = arith.constant 0 : index
    %c0_8 = arith.constant 0 : index
    %7 = vector.load %arg5[%c0_7, %c0_8] : memref<32x32xbf16, #tpu.memory_space<vmem>>, vector<32x32xbf16>
    %cst_9 = arith.constant dense<0.000000e+00> : vector<8x32xf32>
    %8 = tpu.matmul %3, %7, %cst_9 {dimension_numbers = #tpu.dot_dimension_numbers<[1], [0], [0], [1], [0, 0, 1, 1], [], []>} : vector<8x32xbf16>, vector<32x32xbf16>, vector<8x32xf32> -> vector<8x32xf32>
    %9 = arith.truncf %8 : vector<8x32xf32> to vector<8x32xbf16>
    %c0_10 = arith.constant 0 : index
    %c0_11 = arith.constant 0 : index
    %10 = vector.load %arg6[%c0_10, %c0_11] : memref<32x32xbf16, #tpu.memory_space<vmem>>, vector<32x32xbf16>
    %cst_12 = arith.constant dense<0.000000e+00> : vector<8x32xf32>
    %11 = tpu.matmul %3, %10, %cst_12 {dimension_numbers = #tpu.dot_dimension_numbers<[1], [0], [0], [1], [0, 0, 1, 1], [], []>} : vector<8x32xbf16>, vector<32x32xbf16>, vector<8x32xf32> -> vector<8x32xf32>
    %12 = arith.truncf %11 : vector<8x32xf32> to vector<8x32xbf16>
    %cst_13 = arith.constant 0.000000e+00 : f32
    %13 = vector.broadcast %cst_13 : f32 to vector<8x32xf32>
    %14 = vector.extract_strided_slice %6 {offsets = [0, 0], sizes = [8, 8], strides = [1, 1]} : vector<8x32xbf16> to vector<8x8xbf16>
    %15 = vector.extract_strided_slice %9 {offsets = [0, 0], sizes = [8, 8], strides = [1, 1]} : vector<8x32xbf16> to vector<8x8xbf16>
    %16 = vector.extract_strided_slice %12 {offsets = [0, 0], sizes = [8, 8], strides = [1, 1]} : vector<8x32xbf16> to vector<8x8xbf16>
    %cst_14 = arith.constant dense<0.000000e+00> : vector<8x8xf32>
    %17 = tpu.matmul %14, %15, %cst_14 {dimension_numbers = #tpu.dot_dimension_numbers<[1], [1], [0], [0], [0, 0, 1, 0], [], []>} : vector<8x8xbf16>, vector<8x8xbf16>, vector<8x8xf32> -> vector<8x8xf32>
    %cst_15 = arith.constant dense<0xFF800000> : vector<8xf32>
    %18 = vector.multi_reduction <maximumf>, %17, %cst_15 [1] : vector<8x8xf32> to vector<8xf32>
    %19 = vector.shape_cast %18 : vector<8xf32> to vector<8x1xf32>
    %20 = vector.broadcast %19 : vector<8x1xf32> to vector<8x8xf32>
    %21 = arith.subf %17, %20 : vector<8x8xf32>
    %22 = math.exp %21 : vector<8x8xf32>
    %cst_16 = arith.constant dense<0.000000e+00> : vector<8xf32>
    %23 = vector.multi_reduction <add>, %22, %cst_16 [1] : vector<8x8xf32> to vector<8xf32>
    %24 = vector.shape_cast %23 : vector<8xf32> to vector<8x1xf32>
    %25 = arith.truncf %22 : vector<8x8xf32> to vector<8x8xbf16>
    %cst_17 = arith.constant dense<0.000000e+00> : vector<8x8xf32>
    %26 = tpu.matmul %25, %16, %cst_17 {dimension_numbers = #tpu.dot_dimension_numbers<[1], [0], [0], [1], [0, 0, 1, 1], [], []>} : vector<8x8xbf16>, vector<8x8xbf16>, vector<8x8xf32> -> vector<8x8xf32>
    %27 = tpu.reciprocal %24 {approx = true} : vector<8x1xf32> -> vector<8x1xf32>
    %28 = vector.broadcast %27 : vector<8x1xf32> to vector<8x8xf32>
    %29 = arith.mulf %26, %28 : vector<8x8xf32>
    %30 = arith.truncf %29 : vector<8x8xf32> to vector<8x8xbf16>
    %c0_18 = arith.constant 0 : index
    %c0_19 = arith.constant 0 : index
    %31 = vector.load %arg7[%c0_18, %c0_19] : memref<32x32xbf16, #tpu.memory_space<vmem>>, vector<8x32xbf16>
    %cst_20 = arith.constant dense<0.000000e+00> : vector<8x32xf32>
    %32 = tpu.matmul %30, %31, %cst_20 {dimension_numbers = #tpu.dot_dimension_numbers<[1], [0], [0], [1], [0, 0, 1, 1], [], []>} : vector<8x8xbf16>, vector<8x32xbf16>, vector<8x32xf32> -> vector<8x32xf32>
    %33 = arith.addf %13, %32 : vector<8x32xf32>
    %34 = vector.extract_strided_slice %6 {offsets = [0, 8], sizes = [8, 8], strides = [1, 1]} : vector<8x32xbf16> to vector<8x8xbf16>
    %35 = vector.extract_strided_slice %9 {offsets = [0, 8], sizes = [8, 8], strides = [1, 1]} : vector<8x32xbf16> to vector<8x8xbf16>
    %36 = vector.extract_strided_slice %12 {offsets = [0, 8], sizes = [8, 8], strides = [1, 1]} : vector<8x32xbf16> to vector<8x8xbf16>
    %cst_21 = arith.constant dense<0.000000e+00> : vector<8x8xf32>
    %37 = tpu.matmul %34, %35, %cst_21 {dimension_numbers = #tpu.dot_dimension_numbers<[1], [1], [0], [0], [0, 0, 1, 0], [], []>} : vector<8x8xbf16>, vector<8x8xbf16>, vector<8x8xf32> -> vector<8x8xf32>
    %cst_22 = arith.constant dense<0xFF800000> : vector<8xf32>
    %38 = vector.multi_reduction <maximumf>, %37, %cst_22 [1] : vector<8x8xf32> to vector<8xf32>
    %39 = vector.shape_cast %38 : vector<8xf32> to vector<8x1xf32>
    %40 = vector.broadcast %39 : vector<8x1xf32> to vector<8x8xf32>
    %41 = arith.subf %37, %40 : vector<8x8xf32>
    %42 = math.exp %41 : vector<8x8xf32>
    %cst_23 = arith.constant dense<0.000000e+00> : vector<8xf32>
    %43 = vector.multi_reduction <add>, %42, %cst_23 [1] : vector<8x8xf32> to vector<8xf32>
    %44 = vector.shape_cast %43 : vector<8xf32> to vector<8x1xf32>
    %45 = arith.truncf %42 : vector<8x8xf32> to vector<8x8xbf16>
    %cst_24 = arith.constant dense<0.000000e+00> : vector<8x8xf32>
    %46 = tpu.matmul %45, %36, %cst_24 {dimension_numbers = #tpu.dot_dimension_numbers<[1], [0], [0], [1], [0, 0, 1, 1], [], []>} : vector<8x8xbf16>, vector<8x8xbf16>, vector<8x8xf32> -> vector<8x8xf32>
    %47 = tpu.reciprocal %44 {approx = true} : vector<8x1xf32> -> vector<8x1xf32>
    %48 = vector.broadcast %47 : vector<8x1xf32> to vector<8x8xf32>
    %49 = arith.mulf %46, %48 : vector<8x8xf32>
    %50 = arith.truncf %49 : vector<8x8xf32> to vector<8x8xbf16>
    %c8 = arith.constant 8 : index
    %c0_25 = arith.constant 0 : index
    %51 = vector.load %arg7[%c8, %c0_25] : memref<32x32xbf16, #tpu.memory_space<vmem>>, vector<8x32xbf16>
    %cst_26 = arith.constant dense<0.000000e+00> : vector<8x32xf32>
    %52 = tpu.matmul %50, %51, %cst_26 {dimension_numbers = #tpu.dot_dimension_numbers<[1], [0], [0], [1], [0, 0, 1, 1], [], []>} : vector<8x8xbf16>, vector<8x32xbf16>, vector<8x32xf32> -> vector<8x32xf32>
    %53 = arith.addf %33, %52 : vector<8x32xf32>
    %54 = vector.extract_strided_slice %6 {offsets = [0, 16], sizes = [8, 8], strides = [1, 1]} : vector<8x32xbf16> to vector<8x8xbf16>
    %55 = vector.extract_strided_slice %9 {offsets = [0, 16], sizes = [8, 8], strides = [1, 1]} : vector<8x32xbf16> to vector<8x8xbf16>
    %56 = vector.extract_strided_slice %12 {offsets = [0, 16], sizes = [8, 8], strides = [1, 1]} : vector<8x32xbf16> to vector<8x8xbf16>
    %cst_27 = arith.constant dense<0.000000e+00> : vector<8x8xf32>
    %57 = tpu.matmul %54, %55, %cst_27 {dimension_numbers = #tpu.dot_dimension_numbers<[1], [1], [0], [0], [0, 0, 1, 0], [], []>} : vector<8x8xbf16>, vector<8x8xbf16>, vector<8x8xf32> -> vector<8x8xf32>
    %cst_28 = arith.constant dense<0xFF800000> : vector<8xf32>
    %58 = vector.multi_reduction <maximumf>, %57, %cst_28 [1] : vector<8x8xf32> to vector<8xf32>
    %59 = vector.shape_cast %58 : vector<8xf32> to vector<8x1xf32>
    %60 = vector.broadcast %59 : vector<8x1xf32> to vector<8x8xf32>
    %61 = arith.subf %57, %60 : vector<8x8xf32>
    %62 = math.exp %61 : vector<8x8xf32>
    %cst_29 = arith.constant dense<0.000000e+00> : vector<8xf32>
    %63 = vector.multi_reduction <add>, %62, %cst_29 [1] : vector<8x8xf32> to vector<8xf32>
    %64 = vector.shape_cast %63 : vector<8xf32> to vector<8x1xf32>
    %65 = arith.truncf %62 : vector<8x8xf32> to vector<8x8xbf16>
    %cst_30 = arith.constant dense<0.000000e+00> : vector<8x8xf32>
    %66 = tpu.matmul %65, %56, %cst_30 {dimension_numbers = #tpu.dot_dimension_numbers<[1], [0], [0], [1], [0, 0, 1, 1], [], []>} : vector<8x8xbf16>, vector<8x8xbf16>, vector<8x8xf32> -> vector<8x8xf32>
    %67 = tpu.reciprocal %64 {approx = true} : vector<8x1xf32> -> vector<8x1xf32>
    %68 = vector.broadcast %67 : vector<8x1xf32> to vector<8x8xf32>
    %69 = arith.mulf %66, %68 : vector<8x8xf32>
    %70 = arith.truncf %69 : vector<8x8xf32> to vector<8x8xbf16>
    %c16 = arith.constant 16 : index
    %c0_31 = arith.constant 0 : index
    %71 = vector.load %arg7[%c16, %c0_31] : memref<32x32xbf16, #tpu.memory_space<vmem>>, vector<8x32xbf16>
    %cst_32 = arith.constant dense<0.000000e+00> : vector<8x32xf32>
    %72 = tpu.matmul %70, %71, %cst_32 {dimension_numbers = #tpu.dot_dimension_numbers<[1], [0], [0], [1], [0, 0, 1, 1], [], []>} : vector<8x8xbf16>, vector<8x32xbf16>, vector<8x32xf32> -> vector<8x32xf32>
    %73 = arith.addf %53, %72 : vector<8x32xf32>
    %74 = vector.extract_strided_slice %6 {offsets = [0, 24], sizes = [8, 8], strides = [1, 1]} : vector<8x32xbf16> to vector<8x8xbf16>
    %75 = vector.extract_strided_slice %9 {offsets = [0, 24], sizes = [8, 8], strides = [1, 1]} : vector<8x32xbf16> to vector<8x8xbf16>
    %76 = vector.extract_strided_slice %12 {offsets = [0, 24], sizes = [8, 8], strides = [1, 1]} : vector<8x32xbf16> to vector<8x8xbf16>
    %cst_33 = arith.constant dense<0.000000e+00> : vector<8x8xf32>
    %77 = tpu.matmul %74, %75, %cst_33 {dimension_numbers = #tpu.dot_dimension_numbers<[1], [1], [0], [0], [0, 0, 1, 0], [], []>} : vector<8x8xbf16>, vector<8x8xbf16>, vector<8x8xf32> -> vector<8x8xf32>
    %cst_34 = arith.constant dense<0xFF800000> : vector<8xf32>
    %78 = vector.multi_reduction <maximumf>, %77, %cst_34 [1] : vector<8x8xf32> to vector<8xf32>
    %79 = vector.shape_cast %78 : vector<8xf32> to vector<8x1xf32>
    %80 = vector.broadcast %79 : vector<8x1xf32> to vector<8x8xf32>
    %81 = arith.subf %77, %80 : vector<8x8xf32>
    %82 = math.exp %81 : vector<8x8xf32>
    %cst_35 = arith.constant dense<0.000000e+00> : vector<8xf32>
    %83 = vector.multi_reduction <add>, %82, %cst_35 [1] : vector<8x8xf32> to vector<8xf32>
    %84 = vector.shape_cast %83 : vector<8xf32> to vector<8x1xf32>
    %85 = arith.truncf %82 : vector<8x8xf32> to vector<8x8xbf16>
    %cst_36 = arith.constant dense<0.000000e+00> : vector<8x8xf32>
    %86 = tpu.matmul %85, %76, %cst_36 {dimension_numbers = #tpu.dot_dimension_numbers<[1], [0], [0], [1], [0, 0, 1, 1], [], []>} : vector<8x8xbf16>, vector<8x8xbf16>, vector<8x8xf32> -> vector<8x8xf32>
    %87 = tpu.reciprocal %84 {approx = true} : vector<8x1xf32> -> vector<8x1xf32>
    %88 = vector.broadcast %87 : vector<8x1xf32> to vector<8x8xf32>
    %89 = arith.mulf %86, %88 : vector<8x8xf32>
    %90 = arith.truncf %89 : vector<8x8xf32> to vector<8x8xbf16>
    %c24 = arith.constant 24 : index
    %c0_37 = arith.constant 0 : index
    %91 = vector.load %arg7[%c24, %c0_37] : memref<32x32xbf16, #tpu.memory_space<vmem>>, vector<8x32xbf16>
    %cst_38 = arith.constant dense<0.000000e+00> : vector<8x32xf32>
    %92 = tpu.matmul %90, %91, %cst_38 {dimension_numbers = #tpu.dot_dimension_numbers<[1], [0], [0], [1], [0, 0, 1, 1], [], []>} : vector<8x8xbf16>, vector<8x32xbf16>, vector<8x32xf32> -> vector<8x32xf32>
    %93 = arith.addf %73, %92 : vector<8x32xf32>
    %c0_39 = arith.constant 0 : index
    %c0_40 = arith.constant 0 : index
    %94 = vector.load %arg8[%c0_39, %c0_40] : memref<1x32xf32, #tpu.memory_space<vmem>>, vector<1x32xf32>
    %95 = vector.broadcast %94 : vector<1x32xf32> to vector<8x32xf32>
    %96 = arith.addf %93, %95 : vector<8x32xf32>
    %c0_41 = arith.constant 0 : index
    %c0_42 = arith.constant 0 : index
    %c0_43 = arith.constant 0 : index
    %97 = vector.load %arg9[%c0_41, %c0_42, %c0_43] : memref<1x8x32xf32, #tpu.memory_space<vmem>>, vector<1x8x32xf32>
    %98 = vector.shape_cast %97 : vector<1x8x32xf32> to vector<8x32xf32>
    %99 = vector.shape_cast %96 : vector<8x32xf32> to vector<1x8x32xf32>
    tpu.vector_store %arg9[%c0_41, %c0_42, %c0_43], %99 {strides = array<i32>} : memref<1x8x32xf32, #tpu.memory_space<vmem>>, vector<1x8x32xf32>,
    return
  }
  func.func @transform_0(%arg0: i32, %arg1: i32) -> (i32, i32, i32) {
    %c0_i32 = arith.constant 0 : i32
    %c0_i32_0 = arith.constant 0 : i32
    return %arg0, %arg1, %c0_i32 : i32, i32, i32
  }
  func.func @transform_1(%arg0: i32, %arg1: i32) -> (i32, i32, i32) {
    %c0_i32 = arith.constant 0 : i32
    %c0_i32_0 = arith.constant 0 : i32
    %c0_i32_1 = arith.constant 0 : i32
    return %arg0, %c0_i32, %c0_i32_0 : i32, i32, i32
  }
  func.func @transform_2(%arg0: i32, %arg1: i32) -> (i32, i32) {
    %c0_i32 = arith.constant 0 : i32
    %c0_i32_0 = arith.constant 0 : i32
    %c0_i32_1 = arith.constant 0 : i32
    return %c0_i32, %c0_i32_0 : i32, i32
  }
  func.func @transform_3(%arg0: i32, %arg1: i32) -> (i32, i32) {
    %c0_i32 = arith.constant 0 : i32
    %c0_i32_0 = arith.constant 0 : i32
    %c0_i32_1 = arith.constant 0 : i32
    return %c0_i32, %c0_i32_0 : i32, i32
  }
  func.func @transform_4(%arg0: i32, %arg1: i32) -> (i32, i32) {
    %c0_i32 = arith.constant 0 : i32
    %c0_i32_0 = arith.constant 0 : i32
    %c0_i32_1 = arith.constant 0 : i32
    return %c0_i32, %c0_i32_0 : i32, i32
  }
  func.func @transform_5(%arg0: i32, %arg1: i32) -> (i32, i32) {
    %c0_i32 = arith.constant 0 : i32
    %c0_i32_0 = arith.constant 0 : i32
    %c0_i32_1 = arith.constant 0 : i32
    return %c0_i32, %c0_i32_0 : i32, i32
  }
  func.func @transform_6(%arg0: i32, %arg1: i32) -> (i32, i32) {
    %c0_i32 = arith.constant 0 : i32
    %c0_i32_0 = arith.constant 0 : i32
    %c0_i32_1 = arith.constant 0 : i32
    return %c0_i32, %c0_i32_0 : i32, i32
  }
  func.func @transform_7(%arg0: i32, %arg1: i32) -> (i32, i32, i32) {
    %c0_i32 = arith.constant 0 : i32
    %c0_i32_0 = arith.constant 0 : i32
    return %arg0, %arg1, %c0_i32 : i32, i32, i32
  }
}

</mosaic_0001>

<bundles_post_ra>
// kernel: tpu_custom_call.1
= control target key start
LH: loop header
LB: loop body
LE: loop exit
PB: predicated region body
PF: predicated region fallthrough
CT: control target
= control target key end

     0   :  { %s2396_s0 = inlined_call_operand.hbm [shape: bf16[2,8,32], index: 0, kind: input, shape index: {}]   ;;  %s2397_s1 = inlined_call_operand.hbm [shape: bf16[2,8,32], index: 1, kind: input, shape index: {}]   ;;  %s2398_s2 = inlined_call_operand.hbm [shape: bf16[32,32], index: 2, kind: input, shape index: {}]   ;;  %s2399_s3 = inlined_call_operand.hbm [shape: bf16[32,32], index: 3, kind: input, shape index: {}]   ;;  %s2400_s4 = inlined_call_operand.hbm [shape: bf16[32,32], index: 4, kind: input, shape index: {}]   ;;  %s2401_s5 = inlined_call_operand.vmem [shape: bf16[32,32], index: 5, kind: input, shape index: {}]   ;;  %s2402_s6 = inlined_call_operand.vmem [shape: f32[1,32], index: 6, kind: input, shape index: {}]   ;;  %s2403_s7 = inlined_call_operand.hbm [shape: f32[2,8,32], index: 7, kind: output, shape index: {}]  }
   0x1   :  { %2411 = sst [smem:[#allocation19_spill]] %s2398_s2 }
   0x2   :  { %2412 = sst [smem:[#allocation20_spill]] %s2399_s3 }
   0x3   :  { %2413 = sst [smem:[#allocation21_spill]] %s2400_s4 }
   0x4   :  { %2414 = sst [smem:[#allocation22_spill]] %s2403_s7 }
   0x5   :  { %12 = vsyncpa [#allocation3], 0 }
   0x6   :  { %14 = vsyncpa [#allocation3 + $0x1], 0 }
   0x7   :  { %15 = vsyncpa [#allocation6], 0 }
   0x8   :  { %17 = vsyncpa [#allocation6 + $0x1], 0 }
   0x9   :  { %18 = vsyncpa [#allocation9], 0 }
   0xa   :  { %19 = vsyncpa [#allocation4], 0 }
   0xb   :  { %21 = vsyncpa [#allocation4 + $0x1], 0  ;;  %s1953_s24 = smov 0   ;;  %s1955_s25 = smov 0  }
   0xc   :  { %s1957_s26 = smov 0   ;;  %s1959_s27 = smov 0  }
   0xd   :  { %s1961_s28 = smov 0   ;;  %s1963_s29 = smov 0  }
   0xe LB: > { %2415 = sst [smem:[#allocation17_spill]] %s1878_s24  ;;  %s1984_s30 = sadd.s32 4294967295, %s1898_s29   ;;  %s1898_s29 = sphi %s1963_s29, %s27_s29   ;;  %s1894_s28 = sphi %s1961_s28, %s2444_s28   ;;  %s1890_s27 = sphi %s1959_s27, %s2443_s27   ;;  %s1886_s26 = sphi %s1957_s26, %s2442_s26   ;;  %s1882_s25 = sphi %s1955_s25, %s2441_s25   ;;  %s1878_s24 = sphi %s1953_s24, %s2440_s24  }
   0xf   : > { %s1361_s8 = sadd.s32 4294967294, %s1898_s29   ;;  %p61_p0 = scmp.ne.s32.totalorder %s1882_s25, %s1878_s24 }
  0x10   : > { %p2404_p1 = scmp.eq.s32.totalorder %s1984_s30, 0  ;;  %p224_p3 = scmp.eq.s32.totalorder %s1361_s8, 1 }
  0x11   : > { %p1362_p5 = scmp.ge.s32.totalorder %s1898_s29, 1  ;;  %p231_p7 = scmp.lt.s32.totalorder %s1898_s29, 3 }
  0x12   : > { %p1993_p4 = por %p2404_p1, %p61_p0  ;;  %p1998_p6 = por %p224_p3, %p61_p0 }
  0x13   : > { %p2003_p8 = pnand %p1362_p5, %p231_p7  ;;  %s1900_s12 = smov [#allocation7]  }
  0x14   : > { %s2416_s9 = scalar_select %p1993_p4, 1, 0 }
  0x15   : > { %s2417_s10 = scalar_select %p1998_p6, 1, 0 }
  0x16   : > { %s2419_s11 = scalar_select %p2003_p8, 1, 0 }
  0x17   : > { %2418 = sst [smem:[#allocation18_spill]] %s2417_s10  ;;  %s243_s13 = sshll.u32 %s1900_s12, 4  ;;  %s2007_s13 = int_to_ptr.vmem [resolvable:$true] %s243_s13 }
  0x18   : > { %p1551_p9 = pneg %p2003_p8  ;;  %s1901_s15 = smov [#allocation8]  }
  0x19   : > { %s256_s16 = sshll.u32 %s1901_s15, 4  ;;  %s1902_s17 = smov [#allocation10]   ;;  %s2018_s16 = int_to_ptr.vmem [resolvable:$true] %s256_s16 }
  0x1a   : > { %p2014_p11 = pnand %p1551_p9, %p2404_p1  ;;  %s2020_s18 = sshll.u32 %s1902_s17, 4  ;;  %s270_s18 = int_to_ptr.vmem [resolvable:$true] %s2020_s18 }
  0x1b   : > { %s2421_s2 = sld [smem:[#allocation19_spill]] }
  0x1c   : > { %p2030_p13 = pneg %p2014_p11 }
  0x21   : > { %s1660_s21 = scalar_lea.hbm %s2421_s2, 256 }
  0x22   : > { %p1661_p12 = scmp.ne.s32.totalorder %s2421_s2, %s1660_s21  ;;  %p1667_p5 = scmp.lt.u32.totalorder %s1660_s21, %s2421_s2 }
  0x24   : > { %p1663_p0 = pnand %p2030_p13, %p1661_p12 }
  0x26   : > { %p1664_p3 = pneg %p1663_p0 }
  0x28   : > { %p1669_p7 = pnand %p1667_p5, %p1664_p3 }
  0x2a   : > { %1672 = shalt.err (!%p1669_p7)
}
  0x2b   : > { %s1673_s17 = scalar_lea.vmem %s2007_s13, 256  ;;  %p1681_p2 = scmp.lt.s32.totalorder %s2007_s13, %s2007_s13 }
  0x2c   : > { %p1674_p9 = scmp.ne.s32.totalorder %s2007_s13, %s1673_s17  ;;  %p1682_p6 = scmp.lt.s32.totalorder %s1673_s17, %s1673_s17 }
  0x2e   : > { %p1676_p10 = pnand %p1674_p9, %p2030_p13  ;;  %p1683_p12 = por %p1682_p6, %p1681_p2 }
  0x30   : > { %p1677_p1 = pneg %p1676_p10 }
  0x32   : > { %p1684_p0 = pnand %p1683_p12, %p1677_p1 }
  0x34   : > { %1687 = shalt.err (!%p1684_p0)
}
  0x35   : > { %s1903_s19 = smov 64   ;;  %s1904_s20 = smov 4  }
  0x36   : > { %1554 = dma.hbm_to_vmem [thread:$0]  (!%p2014_p11), %s2421_s2, 256, %s2007_s13, [#allocation6], %s1903_s19, %s1903_s19, %s1904_s20  }
  0x37   : > { %s2423_s3 = sld [smem:[#allocation20_spill]] }
  0x3d   : > { %s1688_s15 = scalar_lea.hbm %s2423_s3, 256 }
  0x3e   : > { %p1689_p1 = scmp.ne.s32.totalorder %s2423_s3, %s1688_s15  ;;  %p1695_p10 = scmp.lt.u32.totalorder %s1688_s15, %s2423_s3 }
  0x40   : > { %p1691_p2 = pnand %p1689_p1, %p2030_p13 }
  0x42   : > { %p1692_p6 = pneg %p1691_p2 }
  0x44   : > { %p1697_p3 = pnand %p1695_p10, %p1692_p6 }
  0x46   : > { %1700 = shalt.err (!%p1697_p3)
}
  0x47   : > { %s1701_s13 = scalar_lea.vmem %s2018_s16, 256  ;;  %p1709_p12 = scmp.lt.s32.totalorder %s2018_s16, %s2018_s16 }
  0x48   : > { %p1702_p5 = scmp.ne.s32.totalorder %s2018_s16, %s1701_s13  ;;  %p1710_p0 = scmp.lt.s32.totalorder %s1701_s13, %s1701_s13 }
  0x4a   : > { %p1704_p7 = pnand %p1702_p5, %p2030_p13  ;;  %p1711_p1 = por %p1710_p0, %p1709_p12 }
  0x4c   : > { %p1705_p9 = pneg %p1704_p7 }
  0x4e   : > { %p1712_p2 = pnand %p1711_p1, %p1705_p9 }
  0x50   : > { %1715 = shalt.err (!%p1712_p2)
}
  0x51   : > { %1557 = dma.hbm_to_vmem [thread:$0]  (!%p2014_p11), %s2423_s3, 256, %s2018_s16, [#allocation9], %s1903_s19, %s1903_s19, %s1904_s20  }
  0x52   : > { %s2424_s4 = sld [smem:[#allocation21_spill]] }
  0x58   : > { %s1716_s22 = scalar_lea.hbm %s2424_s4, 256 }
  0x59   : > { %p1717_p6 = scmp.ne.s32.totalorder %s2424_s4, %s1716_s22  ;;  %p1723_p5 = scmp.lt.u32.totalorder %s1716_s22, %s2424_s4 }
  0x5b   : > { %p1719_p10 = pnand %p1717_p6, %p2030_p13 }
  0x5d   : > { %p1720_p3 = pneg %p1719_p10 }
  0x5f   : > { %p1725_p7 = pnand %p1723_p5, %p1720_p3 }
  0x61   : > { %1728 = shalt.err (!%p1725_p7)
}
  0x62   : > { %s1729_s13 = scalar_lea.vmem %s270_s18, 256  ;;  %p1737_p1 = scmp.lt.s32.totalorder %s270_s18, %s270_s18 }
  0x63   : > { %p1730_p9 = scmp.ne.s32.totalorder %s270_s18, %s1729_s13  ;;  %p1738_p2 = scmp.lt.s32.totalorder %s1729_s13, %s1729_s13 }
  0x65   : > { %p1732_p12 = pnand %p1730_p9, %p2030_p13  ;;  %p1739_p4 = por %p1738_p2, %p1737_p1 }
  0x67   : > { %p1733_p0 = pneg %p1732_p12 }
  0x69   : > { %p1740_p8 = pnand %p1739_p4, %p1733_p0 }
  0x6b   : > { %1743 = shalt.err (!%p1740_p8)
}
  0x6c   : > { %1560 = dma.hbm_to_vmem [thread:$0]  (!%p2014_p11), %s2424_s4, 256, %s270_s18, [#allocation9], %s1903_s19, %s1903_s19, %s1904_s20  }
  0x6d   : > { %s48_s8 = sadd.s32 1, %s1886_s26  ;;  %s39_s14 = sadd.s32 1, %s1894_s28 }
  0x6e   : > { %p55_p4 = scmp.ne.s32.totalorder %s1886_s26, %s1882_s25  ;;  %p41_p8 = scmp.ge.s32.totalorder %s39_s14, 2 }
  0x6f   : > { %p56_p13 = scmp.eq.s32.totalorder %s1898_s29, 0  ;;  %p2425_p6 = scmp.eq.s32.totalorder %s1984_s30, 1 }
  0x70   : > { %p1575_p3 = scmp.lt.s32.totalorder %s1898_s29, 2  ;;  %s2446_s14 = smov (%p41_p8, %s39_s14), 0 }
  0x71   : > { %p2109_p10 = por %p2425_p6, %p55_p4  ;;  %p57_p5 = por %p56_p13, %p55_p4 }
  0x72   : > { %s289_s10 = sand.u32 1, %s1886_s26   ;;  %s43_s21 = ssub.s32 %s1894_s28, %s2446_s14 }
  0x73   : > { %s2426_s24 = scalar_select %p2109_p10, 1, 0 }
  0x74   : > { %p46_p11 = scmp.eq.s32.totalorder %s43_s21, 0  ;;  %s2119_s18 = sshll.u32 %s289_s10, 2 }
  0x75   : > { %s1368_s19 = sshll.u32 %s1894_s28, 6  ;;  %s293_s15 = scalar_lea.vmem [#allocation2], %s2119_s18 }
  0x76   : > { %s2123_s20 = scalar_select %p46_p11, %s1886_s26, %s48_s8  }
  0x77   : > { %s2128_s12 = scalar_lea.hbm %s2396_s0, %s1368_s19  ;;  %s301_s17 = sshll.u32 %s293_s15, 4  ;;  %s2131_s17 = int_to_ptr.vmem [resolvable:$true] %s301_s17 }
  0x78   : > { %p2135_p7 = pnand %p1575_p3, %p57_p5  ;;  %s2142_s8 = scalar_lea.hbm %s2397_s1, %s1368_s19 }
  0x79   : > { %s308_s21 = sand.u32 1, %s1898_s29   ;;  %s290_s22 = scalar_lea.sflag [#allocation3], %s289_s10 }
  0x7a   : > { %s1744_s23 = scalar_lea.hbm %s2128_s12, 64  ;;  %p1746_p12 = pneg %p2135_p7 }
  0x7b   : > { %p1745_p9 = scmp.ne.s32.totalorder %s2128_s12, %s1744_s23  ;;  %s1749_s3 = scalar_lea.hbm %s2396_s0, 128 }
  0x7c   : > { %p1750_p2 = scmp.lt.u32.totalorder %s2128_s12, %s2396_s0  ;;  %p1751_p4 = scmp.lt.u32.totalorder %s1749_s3, %s1744_s23 }
  0x7d   : > { %p1747_p0 = pnand %p1746_p12, %p1745_p9  ;;  %p1753_p13 = scmp.lt.u32.totalorder %s1744_s23, %s2128_s12 }
  0x7e   : > { %p1752_p8 = por %p1751_p4, %p1750_p2 }
  0x7f   : > { %p1748_p1 = pneg %p1747_p0 }
  0x80   : > { %p1754_p6 = por %p1753_p13, %p1752_p8 }
  0x82   : > { %p1755_p3 = pnand %p1754_p6, %p1748_p1 }
  0x84   : > { %1758 = shalt.err (!%p1755_p3)
}
  0x85   : > { %s1759_s10 = scalar_lea.vmem %s2131_s17, 64  ;;  %s1905_s2 = smov [#allocation2]  }
  0x86   : > { %p1760_p5 = scmp.ne.s32.totalorder %s2131_s17, %s1759_s10  ;;  %s1764_s19 = sshll.u32 %s1905_s2, 4  ;;  %s1765_s19 = int_to_ptr.vmem [resolvable:$false] %s1764_s19 }
  0x87   : > { %s1766_s4 = scalar_lea.vmem %s1765_s19, 128  ;;  %p1767_p0 = scmp.lt.s32.totalorder %s2131_s17, %s1765_s19 }
  0x88   : > { %p1762_p11 = pnand %p1760_p5, %p1746_p12  ;;  %p1768_p2 = scmp.lt.s32.totalorder %s1766_s4, %s1759_s10 }
  0x8a   : > { %p1763_p9 = pneg %p1762_p11  ;;  %p1769_p4 = por %p1768_p2, %p1767_p0 }
  0x8c   : > { %p1770_p8 = pnand %p1769_p4, %p1763_p9 }
  0x8e   : > { %1773 = shalt.err (!%p1770_p8)
}
  0x8f   : > { %1564 = dma.hbm_to_vmem [thread:$0]  (!%p2135_p7), %s2128_s12, 64, %s2131_s17, %s290_s22  }
  0x90   : > { %s312_s3 = scalar_lea.vmem [#allocation5], %s2119_s18  ;;  %s309_s23 = scalar_lea.sflag [#allocation6], %s308_s21 }
  0x91   : > { %s319_s7 = sshll.u32 %s312_s3, 4  ;;  %s1774_s15 = scalar_lea.hbm %s2142_s8, 64  ;;  %s320_s7 = int_to_ptr.vmem [resolvable:$true] %s319_s7 }
  0x92   : > { %p1775_p1 = scmp.ne.s32.totalorder %s2142_s8, %s1774_s15  ;;  %s1779_s2 = scalar_lea.hbm %s2397_s1, 128 }
  0x93   : > { %p1780_p3 = scmp.lt.u32.totalorder %s2142_s8, %s2397_s1  ;;  %p1781_p5 = scmp.lt.u32.totalorder %s1779_s2, %s1774_s15 }
  0x94   : > { %p1777_p13 = pnand %p1775_p1, %p1746_p12  ;;  %p1783_p9 = scmp.lt.u32.totalorder %s1774_s15, %s2142_s8 }
  0x95   : > { %p1782_p11 = por %p1781_p5, %p1780_p3 }
  0x96   : > { %p1778_p6 = pneg %p1777_p13 }
  0x97   : > { %p1784_p0 = por %p1783_p9, %p1782_p11 }
  0x99   : > { %p1785_p2 = pnand %p1784_p0, %p1778_p6 }
  0x9b   : > { %1788 = shalt.err (!%p1785_p2)
}
  0x9c   : > { %s1789_s18 = scalar_lea.vmem %s320_s7, 64  ;;  %s1906_s12 = smov [#allocation5]  }
  0x9d   : > { %p1790_p4 = scmp.ne.s32.totalorder %s320_s7, %s1789_s18  ;;  %s1794_s17 = sshll.u32 %s1906_s12, 4  ;;  %s1795_s17 = int_to_ptr.vmem [resolvable:$false] %s1794_s17 }
  0x9e   : > { %s1796_s21 = scalar_lea.vmem %s1795_s17, 128  ;;  %p1797_p13 = scmp.lt.s32.totalorder %s320_s7, %s1795_s17 }
  0x9f   : > { %p1792_p8 = pnand %p1790_p4, %p1746_p12  ;;  %p1798_p10 = scmp.lt.s32.totalorder %s1796_s21, %s1789_s18 }
  0xa1   : > { %p1793_p1 = pneg %p1792_p8  ;;  %p1799_p3 = por %p1798_p10, %p1797_p13 }
  0xa3   : > { %p1800_p5 = pnand %p1799_p3, %p1793_p1 }
  0xa5   : > { %1803 = shalt.err (!%p1800_p5)
}
  0xa6   : > { %1567 = dma.hbm_to_vmem [thread:$0]  (!%p2135_p7), %s2142_s8, 64, %s320_s7, %s309_s23  }
  0xa7   : > { %p2428_p6 = scmp.ne.s32.totalorder %s2419_s11, 0 }
  0xa8   : > { %s2195_s22 = sand.u32 (!%p2428_p6), 1, %s1882_s25   ;;  %p2429_p12 = scmp.ne.s32.totalorder (!%p2428_p6), %s2416_s9, 0 }
  0xa9   : > { %328 = sbr.rel (%p2428_p6) target bundleno = 2328 (0x918), region = 48  ;;  %s1372_s3 = sshll.u32 (!%p2428_p6), %s2195_s22, 2 }
  0xaa   : > { %s331_s15 = scalar_lea.sflag (!%p2428_p6), [#allocation3], %s2195_s22  ;;  %s334_s16 = scalar_lea.vmem (!%p2428_p6), [#allocation2], %s1372_s3 }
  0xb0   : > { %1857 = dma.done.wait (%p2429_p12), %s331_s15, 64  }
  0xb1   : > { %1859 = vsyncadd (%p2429_p12), %s331_s15, 4294967232  ;;  %s339_s13 = sand.u32 1, %s1984_s30   ;;  %s343_s11 = scalar_lea.vmem [#allocation5], %s1372_s3 }
  0xb2   : > { %s340_s8 = scalar_lea.sflag [#allocation6], %s339_s13 }
  0xb3   : > { %1861 = dma.done.wait (%p2429_p12), %s340_s8, 64  }
  0xb4   : > { %1863 = vsyncadd (%p2429_p12), %s340_s8, 4294967232  ;;  %p2430_p10 = scmp.eq.s32.totalorder %s1984_s30, 0 }
  0xb6   : > { %1865 = dma.done.wait (%p2430_p10), [#allocation6], 256   ;;  %p2431_p7 = pmov %p2430_p10 }
  0xb8   : > { %1867 = vsyncadd (%p2431_p7), [#allocation6], 4294967040  ;;  %p2432_p11 = pmov %p2431_p7 }
  0xb9   : > { %p2433_p9 = pmov %p2431_p7 }
  0xba   : > { %1869 = dma.done.wait (%p2432_p11), [#allocation9], 512  }
  0xbb   : > { %1871 = vsyncadd (%p2433_p9), [#allocation9], 4294966784  ;;  %v1907_v0 = vmov 0.0   ;;  %vm1908_vm0 = vmmov 0   ;;  %v1638_v1 = vld [vmem:[#allocation7] sm:$0xff]   ;;  %v1639_v2 = vld [vmem:[#allocation8] sm:$0xff]  }
  0xbc   : > { %1437 = vmatprep.subr.bf16.mxu0 %v1907_v0  ;;  %1445 = vmatprep.subr.bf16.mxu1 %v1907_v0  ;;  %v1640_v3 = vld [vmem:[#allocation7 + $0x8] sm:$0xff]   ;;  %v1641_v4 = vld [vmem:[#allocation8 + $0x8] sm:$0xff]   ;;  %v392_v5 = vld [vmem:[%s334_s16] sm:$0xf]  ;;  %vm410_vm1 = vcmask 261120   ;;  %vm572_vm2 = vcmask 64512  }
  0xbd   : > { %1441 = vmatprep.mubr.msk.bf16.mxu0 %vm1908_vm0, %v1907_v0  ;;  %1449 = vmatprep.mubr.msk.bf16.mxu1 %vm1908_vm0, %v1907_v0  ;;  %v1642_v6 = vld [vmem:[#allocation10] sm:$0xff]   ;;  %v393_v7 = vld [vmem:[%s343_s11] sm:$0xf]  ;;  %v1643_v8 = vld [vmem:[#allocation10 + $0x8] sm:$0xff]   ;;  %s1909_s30 = smov 120   ;;  %s1910_s9 = smov 112  }
  0xbe   : > { %1438 = vmatpush3.bf16.msra.mxu0 %v1638_v1  ;;  %1446 = vmatpush3.bf16.msra.mxu1 %v1639_v2  ;;  %vm632_vm3 = vcmask 1043456   ;;  %s1911_s7 = smov 104   ;;  %v679_v50 = vld [vmem:[%s2401_s5] sm:$0xf]  ;;  %v794_v55 = vld [vmem:[%s2401_s5 + $0x4] sm:$0xf] }
  0xbf   : > { %1439 = vmatprep.subr.bf16.mxu0 %v1907_v0  ;;  %1447 = vmatprep.subr.bf16.mxu1 %v1907_v0  ;;  %v845_v54 = vsel %vm632_vm3, %v679_v50, 0  ;;  %v799_v56 = vsel %vm632_vm3, %v794_v55, 0  ;;  %s1377_s21 = sshll.u32 %s2195_s22, 3  ;;  %s1401_s16 = sshll.u32 %s1890_s27, 7 }
  0xc0   : > { %s390_s13 = scalar_lea.vmem [#allocation11], %s1377_s21  ;;  %s1215_s27 = scalar_lea.sflag [#allocation4], %s2195_s22 }
  0xc1   : > { %s1229_s8 = sshll.u32 %s390_s13, 4  ;;  %p2435_p2 = scmp.ne.s32.totalorder %s2426_s24, 0  ;;  %s2348_s8 = int_to_ptr.vmem [resolvable:$true] %s1229_s8 }
  0xc2   : > { %1440 = vmatpush3.bf16.msra.mxu0 %v1640_v3  ;;  %1448 = vmatpush3.bf16.msra.mxu1 %v1641_v4  ;;  %s1804_s23 = scalar_lea.vmem %s2348_s8, 128  ;;  %s1912_s10 = smov [#allocation11]  }
  0xc3   : > { %1453 = vmatprep.subr.bf16.mxu0 %v1907_v0  ;;  %1461 = vmatprep.subr.bf16.mxu1 %v1907_v0  ;;  %p1805_p0 = scmp.ne.s32.totalorder %s2348_s8, %s1804_s23  ;;  %s1808_s2 = sshll.u32 %s1912_s10, 4  ;;  %s1809_s2 = int_to_ptr.vmem [resolvable:$false] %s1808_s2 }
  0xc4   : > { %s1810_s19 = scalar_lea.vmem %s1809_s2, 256  ;;  %p1811_p1 = scmp.lt.s32.totalorder %s2348_s8, %s1809_s2 }
  0xc5   : > { %1442 = vmatmul.mubr.msk.bf16.vlgmr.msra.gmra.mrb[0].mxu0 %vm410_vm1, %v392_v5  ;;  %1450 = vmatmul.mubr.msk.bf16.vlgmr.msra.gmra.mrb[0].mxu1 %vm410_vm1, %v393_v7  ;;  %p1806_p4 = pnand %p1805_p0, %p2435_p2  ;;  %p1812_p13 = scmp.lt.s32.totalorder %s1810_s19, %s1804_s23 }
  0xc6   : > { %1454 = vmatpush3.bf16.msra.mxu0 %v1642_v6  ;;  %1457 = vmatprep.mubr.msk.bf16.mxu0 %vm1908_vm0, %v1907_v0 }
  0xc7   : > { %1455 = vmatprep.subr.bf16.mxu0 %v1907_v0  ;;  %1463 = vmatprep.mubr.msk.bf16.mxu1 %vm1908_vm0, %v1907_v0  ;;  %p1807_p8 = pneg %p1806_p4  ;;  %p1813_p3 = por %p1812_p13, %p1811_p1 }
  0xc9   : > { %p1814_p5 = pnand %p1813_p3, %p1807_p8 }
  0xca   : > { %1456 = vmatpush3.bf16.msra.mxu0 %v1643_v8 }
  0xcb   : > { %1467 = vmatprep.subr.bf16.mxu0 %v1907_v0 }
  0xcd   : > { %1458 = vmatmul.mubr.msk.bf16.vlgmr.msra.gmra.mrb[4].mxu0 %vm410_vm1, %v393_v7 }
  0xce   : > { %1469 = vmatprep.mubr.msk.bf16.mxu0 %vm1908_vm0, %v1907_v0 }
 0x198   : > { %v448_v9 = vpop.f32.mrb[0].mxu0  ;;  %v508_v10 = vpop.f32.mrb[0].mxu1 }
 0x199   : > { %v1443_v11 = vpop.f32.mrb[1].mxu0  ;;  %v2237_v12 = vpack.c.bf16 %v508_v10, %v508_v10  ;;  %v1451_v13 = vpop.f32.mrb[1].mxu1  ;;  %v2240_v18 = vpack.c.bf16 %v448_v9, %v448_v9 }
 0x19a   : > { %v451_v14 = vpop.f32.mrb[2].mxu0  ;;  %v511_v15 = vpop.f32.mrb[2].mxu1 }
 0x19b   : > { %v1444_v16 = vpop.f32.mrb[3].mxu0  ;;  %684 = vrot.lane.b32.xlu0 %v2237_v12, %s1909_s30  ;;  %v1452_v17 = vpop.f32.mrb[3].mxu1  ;;  %v577_v19 = vsel %vm572_vm2, %v2237_v12, 0 }
 0x19c   : > { %1462 = vmatpush3.bf16.xpose.msra.mxu1 %v577_v19 }
 0x19d   : > { %1473 = vmatprep.subr.bf16.mxu1 %v1907_v0 }
 0x19f   : > { %681 = vrot.lane.b32.xlu0 %v2240_v18, %s1909_s30 }
 0x1a0   : > { %v565_v20 = vpop.f32.mrb[4].mxu0 }
 0x1a1   : > { %v2246_v21 = vpack.c.bf16 %v565_v20, %v565_v20  ;;  %v1459_v22 = vpop.f32.mrb[5].mxu0 }
 0x1a2   : > { %v568_v23 = vpop.f32.mrb[6].mxu0 }
 0x1a3   : > { %v1460_v24 = vpop.f32.mrb[7].mxu0  ;;  %1464 = vmatmul.mubr.msk.bf16.vlgmr.msra.gmra.mrb[4].mxu1 %vm572_vm2, %v2240_v18  ;;  %743 = vrot.lane.b32.xlu0 %v2246_v21, %s1909_s30  ;;  %v634_v33 = vsel %vm632_vm3, %v2246_v21, 0 }
 0x1a4   : > { %1475 = vmatprep.mubr.msk.bf16.mxu1 %vm1908_vm0, %v1907_v0  ;;  %1468 = vmatpush3.bf16.msra.mxu0 %v634_v33 }
 0x1a5   : > { %1479 = vmatprep.subr.bf16.mxu0 %v1907_v0 }
 0x1a7   : > { %889 = vrot.lane.b32.xlu0 %v2237_v12, %s1910_s9 }
 0x20d   : > { %v685_v25 = vpop.permute.xlu0 %684 }
 0x20e   : > { %v690_v26 = vsel %vm572_vm2, %v685_v25, 0 }
 0x20f   : > { %1474 = vmatpush3.bf16.xpose.msra.mxu1 %v690_v26 }
 0x210   : > { %1485 = vmatprep.subr.bf16.mxu1 %v1907_v0 }
 0x211   : > { %v682_v27 = vpop.permute.xlu0 %681 }
 0x215   : > { %v744_v43 = vpop.permute.xlu0 %743 }
 0x216   : > { %1476 = vmatmul.mubr.msk.bf16.vlgmr.msra.gmra.mrb[8].mxu1 %vm572_vm2, %v682_v27  ;;  %v749_v44 = vsel %vm632_vm3, %v744_v43, 0 }
 0x217   : > { %1487 = vmatprep.mubr.msk.bf16.mxu1 %vm1908_vm0, %v1907_v0  ;;  %1486 = vmatpush3.bf16.msra.mxu1 %v799_v56 }
 0x218   : > { %1497 = vmatprep.subr.bf16.mxu1 %v1907_v0 }
 0x219   : > { %v890_v57 = vpop.permute.xlu0 %889 }
 0x21a   : > { %v895_v14 = vsel %vm572_vm2, %v890_v57, 0 }
 0x276   : > { %v613_v28 = vpop.f32.mrb[4].mxu1 }
 0x277   : > { %v1465_v29 = vpop.f32.mrb[5].mxu1  ;;  %v619_v30 = vsel %vm572_vm2, %v613_v28, -inf }
 0x278   : > { %620 = vmax.xlane.f32.xlu1 %v619_v30  ;;  %v616_v31 = vpop.f32.mrb[6].mxu1 }
 0x279   : > { %v1466_v32 = vpop.f32.mrb[7].mxu1 }
 0x2e9   : > { %v726_v34 = vpop.f32.mrb[8].mxu1 }
 0x2ea   : > { %v1477_v35 = vpop.f32.mrb[9].mxu1  ;;  %v732_v36 = vsel %vm572_vm2, %v726_v34, -inf }
 0x2eb   : > { %733 = vmax.xlane.f32.xlu1 %v732_v36  ;;  %v729_v37 = vpop.f32.mrb[10].mxu1 }
 0x2ec   : > { %v1478_v38 = vpop.f32.mrb[11].mxu1 }
 0x305   : > { %v621_v39 = vpop.xlane.xlu1 %620 }
 0x306   : > { %v622_v40 = vsub.f32 %v613_v28, %v621_v39  ;;  %v998_v39 = vld [vmem:[%s2401_s5 + $0x8] sm:$0xf] }
 0x308   : > { %v623_v41 = vmul.f32 1.442695, %v622_v40  ;;  %v1003_v40 = vsel %vm632_vm3, %v998_v39, 0 }
 0x30a   : > { %1644 = vpow2.f32 %v623_v41 }
 0x314   : > { %v1645_v42 = vpop.eup %1644 }
 0x315   : > { %v625_v45 = vsel %vm572_vm2, %v1645_v42, 0.0  ;;  %v628_v46 = vpack.c.bf16 %v1645_v42, %v1645_v42 }
 0x316   : > { %626 = vadd.xlane.f32.xlu0 %v625_v45 }
 0x317   : > { %1470 = vmatmul.mubr.msk.bf16.vlgmr.msra.gmra.mrb[8].mxu0 %vm572_vm2, %v628_v46 }
 0x318   : > { %1480 = vmatpush3.bf16.msra.mxu0 %v749_v44  ;;  %1481 = vmatprep.mubr.msk.bf16.mxu0 %vm1908_vm0, %v1907_v0 }
 0x319   : > { %1491 = vmatprep.subr.bf16.mxu0 %v1907_v0 }
 0x32c   : > { %947 = vrot.lane.b32.xlu0 %v2246_v21, %s1910_s9 }
 0x330   : > { %1046 = vrot.lane.b32.xlu0 %v2240_v18, %s1911_s7 }
 0x378   : > { %v734_v47 = vpop.xlane.xlu1 %733 }
 0x379   : > { %v735_v48 = vsub.f32 %v726_v34, %v734_v47 }
 0x37b   : > { %v736_v49 = vmul.f32 1.442695, %v735_v48 }
 0x37d   : > { %1646 = vpow2.f32 %v736_v49 }
 0x387   : > { %v1647_v51 = vpop.eup %1646 }
 0x388   : > { %v738_v52 = vsel %vm572_vm2, %v1647_v51, 0.0  ;;  %v741_v53 = vpack.c.bf16 %v1647_v51, %v1647_v51 }
 0x389   : > { %739 = vadd.xlane.f32.xlu1 %v738_v52 }
 0x38a   : > { %1482 = vmatmul.mubr.msk.bf16.vlgmr.msra.gmra.mrb[12].mxu0 %vm572_vm2, %v741_v53 }
 0x38b   : > { %1492 = vmatpush3.bf16.msra.mxu0 %v845_v54  ;;  %1493 = vmatprep.mubr.msk.bf16.mxu0 %vm1908_vm0, %v1907_v0 }
 0x38c   : > { %1503 = vmatprep.subr.bf16.mxu0 %v1907_v0 }
 0x39a   : > { %887 = vrot.lane.b32.xlu1 %v2240_v18, %s1910_s9  ;;  %s2434_s9 = sld [smem:[#allocation22_spill]] }
 0x3a3   : > { %v627_v58 = vpop.xlane.xlu0 %626 }
 0x3a4   : > { %1648 = vrcp.f32 %v627_v58 }
 0x3a7   : > { %v948_v63 = vpop.permute.xlu0 %947 }
 0x3a8   : > { %v953_v4 = vsel %vm632_vm3, %v948_v63, 0 }
 0x3ae   : > { %v1649_v59 = vpop.eup %1648 }
 0x3ea   : > { %v670_v60 = vpop.f32.mrb[8].mxu0 }
 0x3eb   : > { %v677_v61 = vmul.f32 %v1649_v59, %v670_v60  ;;  %v1471_v62 = vpop.f32.mrb[9].mxu0 }
 0x3ec   : > { %v673_v1 = vpop.f32.mrb[10].mxu0 }
 0x3ed   : > { %v678_v2 = vpack.c.bf16 %v677_v61, %v677_v61  ;;  %v1472_v3 = vpop.f32.mrb[11].mxu0 }
 0x3ef   : > { %1494 = vmatmul.mubr.msk.bf16.vlgmr.msra.gmra.mrb[16].mxu0 %vm572_vm2, %v678_v2 }
 0x3f0   : > { %1504 = vmatpush3.bf16.msra.mxu0 %v953_v4  ;;  %1505 = vmatprep.mubr.msk.bf16.mxu0 %vm1908_vm0, %v1907_v0 }
 0x3f1   : > { %1515 = vmatprep.subr.bf16.mxu0 %v1907_v0 }
 0x416   : > { %v740_v5 = vpop.xlane.xlu1 %739 }
 0x417   : > { %1650 = vrcp.f32 %v740_v5 }
 0x41a   : > { %v888_v15 = vpop.permute.xlu1 %887 }
 0x421   : > { %v1651_v6 = vpop.eup %1650 }
 0x45d   : > { %v785_v7 = vpop.f32.mrb[12].mxu0 }
 0x45e   : > { %v792_v8 = vmul.f32 %v1651_v6, %v785_v7  ;;  %v1483_v9 = vpop.f32.mrb[13].mxu0 }
 0x45f   : > { %v788_v10 = vpop.f32.mrb[14].mxu0 }
 0x460   : > { %v793_v11 = vpack.c.bf16 %v792_v8, %v792_v8  ;;  %v1484_v13 = vpop.f32.mrb[15].mxu0 }
 0x462   : > { %1488 = vmatmul.mubr.msk.bf16.vlgmr.msra.gmra.mrb[12].mxu1 %vm572_vm2, %v793_v11 }
 0x463   : > { %1498 = vmatpush3.bf16.xpose.msra.mxu1 %v895_v14  ;;  %1499 = vmatprep.mubr.msk.bf16.mxu1 %vm1908_vm0, %v1907_v0  ;;  %v1399_v14 = vld [vmem:[%s2402_s6] ss:$0 sm:$0xff] }
 0x464   : > { %1509 = vmatprep.subr.bf16.mxu1 %v1907_v0 }
 0x46a   : > { %1500 = vmatmul.mubr.msk.bf16.vlgmr.msra.gmra.mrb[16].mxu1 %vm572_vm2, %v888_v15 }
 0x46b   : > { %1511 = vmatprep.mubr.msk.bf16.mxu1 %vm1908_vm0, %v1907_v0  ;;  %1510 = vmatpush3.bf16.msra.mxu1 %v1003_v40 }
 0x46c   : > { %1521 = vmatprep.subr.bf16.mxu1 %v1907_v0 }
 0x4c2   : > { %v881_v16 = vpop.f32.mrb[16].mxu0 }
 0x4c3   : > { %v1495_v17 = vpop.f32.mrb[17].mxu0 }
 0x4c4   : > { %v884_v18 = vpop.f32.mrb[18].mxu0 }
 0x4c5   : > { %v1496_v19 = vpop.f32.mrb[19].mxu0 }
 0x535   : > { %v835_v20 = vpop.f32.mrb[12].mxu1 }
 0x536   : > { %v2304_v22 = vadd.f32 %v881_v16, %v835_v20  ;;  %v1489_v23 = vpop.f32.mrb[13].mxu1 }
 0x537   : > { %v838_v24 = vpop.f32.mrb[14].mxu1 }
 0x538   : > { %v1490_v25 = vpop.f32.mrb[15].mxu1 }
 0x53d   : > { %v931_v26 = vpop.f32.mrb[16].mxu1 }
 0x53e   : > { %v1501_v27 = vpop.f32.mrb[17].mxu1  ;;  %v937_v28 = vsel %vm572_vm2, %v931_v26, -inf }
 0x53f   : > { %938 = vmax.xlane.f32.xlu1 %v937_v28  ;;  %v934_v29 = vpop.f32.mrb[18].mxu1 }
 0x540   : > { %v1502_v30 = vpop.f32.mrb[19].mxu1 }
 0x550   : > { %1048 = vrot.lane.b32.xlu1 %v2237_v12, %s1911_s7  ;;  %v1047_v12 = vpop.permute.xlu0 %1046 }
 0x5cc   : > { %v939_v31 = vpop.xlane.xlu1 %938 }
 0x5cd   : > { %v940_v32 = vsub.f32 %v931_v26, %v939_v31 }
 0x5cf   : > { %v941_v33 = vmul.f32 1.442695, %v940_v32 }
 0x5d0   : > { %v1049_v35 = vpop.permute.xlu1 %1048 }
 0x5d1   : > { %1652 = vpow2.f32 %v941_v33  ;;  %v1054_v38 = vsel %vm572_vm2, %v1049_v35, 0 }
 0x5db   : > { %v1653_v34 = vpop.eup %1652 }
 0x5dc   : > { %v943_v36 = vsel %vm572_vm2, %v1653_v34, 0.0  ;;  %v946_v37 = vpack.c.bf16 %v1653_v34, %v1653_v34 }
 0x5dd   : > { %944 = vadd.xlane.f32.xlu0 %v943_v36 }
 0x5de   : > { %1506 = vmatmul.mubr.msk.bf16.vlgmr.msra.gmra.mrb[20].mxu0 %vm572_vm2, %v946_v37 }
 0x5df   : > { %1516 = vmatpush3.bf16.xpose.msra.mxu0 %v1054_v38  ;;  %1517 = vmatprep.mubr.msk.bf16.mxu0 %vm1908_vm0, %v1907_v0 }
 0x5e0   : > { %1527 = vmatprep.subr.bf16.mxu0 %v1907_v0 }
 0x5e6   : > { %1518 = vmatmul.mubr.msk.bf16.vlgmr.msra.gmra.mrb[24].mxu0 %vm572_vm2, %v1047_v12 }
 0x5e7   : > { %1529 = vmatprep.mubr.msk.bf16.mxu0 %vm1908_vm0, %v1907_v0 }
 0x5f3   : > { %1106 = vrot.lane.b32.xlu0 %v2246_v21, %s1911_s7  ;;  %s2346_s7 = scalar_lea.hbm %s2434_s9, %s1401_s16 }
 0x66a   : > { %v945_v41 = vpop.xlane.xlu0 %944 }
 0x66b   : > { %1654 = vrcp.f32 %v945_v41 }
 0x66e   : > { %v1107_v46 = vpop.permute.xlu0 %1106 }
 0x66f   : > { %v1112_v21 = vsel %vm632_vm3, %v1107_v46, 0 }
 0x675   : > { %v1655_v42 = vpop.eup %1654 }
 0x6b1   : > { %v989_v43 = vpop.f32.mrb[20].mxu0 }
 0x6b2   : > { %v996_v44 = vmul.f32 %v1655_v42, %v989_v43  ;;  %v1507_v45 = vpop.f32.mrb[21].mxu0 }
 0x6b3   : > { %v992_v47 = vpop.f32.mrb[22].mxu0 }
 0x6b4   : > { %v997_v48 = vpack.c.bf16 %v996_v44, %v996_v44  ;;  %v1508_v49 = vpop.f32.mrb[23].mxu0 }
 0x6b6   : > { %1512 = vmatmul.mubr.msk.bf16.vlgmr.msra.gmra.mrb[20].mxu1 %vm572_vm2, %v997_v48 }
 0x6b7   : > { %1522 = vmatpush3.bf16.msra.mxu1 %v1112_v21  ;;  %1523 = vmatprep.mubr.msk.bf16.mxu1 %vm1908_vm0, %v1907_v0  ;;  %v1157_v0 = vld [vmem:[%s2401_s5 + $0xc] sm:$0xf] }
 0x6b8   : > { %v1162_v61 = vsel %vm632_vm3, %v1157_v0, 0 }
 0x6b9   : > { %v1090_v50 = vpop.f32.mrb[24].mxu0  ;;  %1528 = vmatpush3.bf16.msra.mxu0 %v1162_v61 }
 0x6ba   : > { %v1519_v51 = vpop.f32.mrb[25].mxu0  ;;  %v1096_v52 = vsel %vm572_vm2, %v1090_v50, -inf }
 0x6bb   : > { %1097 = vmax.xlane.f32.xlu1 %v1096_v52  ;;  %v1093_v53 = vpop.f32.mrb[26].mxu0 }
 0x6bc   : > { %v1520_v54 = vpop.f32.mrb[27].mxu0 }
 0x748   : > { %v1098_v55 = vpop.xlane.xlu1 %1097 }
 0x749   : > { %v1099_v56 = vsub.f32 %v1090_v50, %v1098_v55 }
 0x74b   : > { %v1100_v57 = vmul.f32 1.442695, %v1099_v56 }
 0x74d   : > { %1656 = vpow2.f32 %v1100_v57 }
 0x757   : > { %v1657_v58 = vpop.eup %1656 }
 0x758   : > { %v1102_v59 = vsel %vm572_vm2, %v1657_v58, 0.0  ;;  %v1105_v60 = vpack.c.bf16 %v1657_v58, %v1657_v58 }
 0x759   : > { %1103 = vadd.xlane.f32.xlu1 %v1102_v59 }
 0x75a   : > { %1524 = vmatmul.mubr.msk.bf16.vlgmr.msra.gmra.mrb[24].mxu1 %vm572_vm2, %v1105_v60 }
 0x789   : > { %v1039_v62 = vpop.f32.mrb[20].mxu1 }
 0x78a   : > { %v1045_v63 = vadd.f32 %v1039_v62, %v2304_v22  ;;  %v1513_v1 = vpop.f32.mrb[21].mxu1 }
 0x78b   : > { %v1042_v2 = vpop.f32.mrb[22].mxu1 }
 0x78c   : > { %v1514_v3 = vpop.f32.mrb[23].mxu1 }
 0x7e6   : > { %v1104_v4 = vpop.xlane.xlu1 %1103 }
 0x7e7   : > { %1658 = vrcp.f32 %v1104_v4 }
 0x7f1   : > { %v1659_v5 = vpop.eup %1658 }
 0x82d   : > { %v1148_v6 = vpop.f32.mrb[24].mxu1 }
 0x82e   : > { %v1155_v7 = vmul.f32 %v1659_v5, %v1148_v6  ;;  %v1525_v8 = vpop.f32.mrb[25].mxu1 }
 0x82f   : > { %v1151_v9 = vpop.f32.mrb[26].mxu1 }
 0x830   : > { %v1156_v10 = vpack.c.bf16 %v1155_v7, %v1155_v7  ;;  %v1526_v11 = vpop.f32.mrb[27].mxu1 }
 0x832   : > { %1530 = vmatmul.mubr.msk.bf16.vlgmr.msra.gmra.mrb[28].mxu0 %vm572_vm2, %v1156_v10 }
 0x905   : > { %v1198_v13 = vpop.f32.mrb[28].mxu0 }
 0x906   : > { %v1204_v15 = vadd.f32 %v1198_v13, %v1045_v63  ;;  %v1531_v16 = vpop.f32.mrb[29].mxu0 }
 0x907   : > { %v1201_v17 = vpop.f32.mrb[30].mxu0 }
 0x908   : > { %v1212_v18 = vadd.f32 %v1399_v14, %v1204_v15  ;;  %v1532_v19 = vpop.f32.mrb[31].mxu0 }
 0x90a   : > { %1213 = vst.msk [vmem:[%s390_s13] sm:$0xff] %vm410_vm1, %v1212_v18 }
 0x90b   : > { %1817 = shalt.err (!%p1814_p5)
}
 0x90c   : > { %s1818_s22 = scalar_lea.hbm %s2346_s7, 128  ;;  %s1822_s12 = scalar_lea.hbm %s2434_s9, 256 }
 0x90d   : > { %p1819_p6 = scmp.ne.s32.totalorder %s2346_s7, %s1818_s22  ;;  %p1823_p7 = scmp.lt.u32.totalorder %s2346_s7, %s2434_s9 }
 0x90e   : > { %p1824_p11 = scmp.lt.u32.totalorder %s1822_s12, %s1818_s22  ;;  %p1826_p0 = scmp.lt.u32.totalorder %s1818_s22, %s2346_s7 }
 0x90f   : > { %p1820_p12 = pnand %p1819_p6, %p2435_p2 }
 0x910   : > { %p1825_p9 = por %p1824_p11, %p1823_p7 }
 0x911   : > { %p1821_p10 = pneg %p1820_p12 }
 0x912   : > { %p1827_p4 = por %p1826_p0, %p1825_p9 }
 0x914   : > { %p1828_p8 = pnand %p1827_p4, %p1821_p10 }
 0x916   : > { %1831 = shalt.err (!%p1828_p8)
}
 0x917   : > { %1549 = dma.vmem_to_hbm [thread:$0]  (%p2435_p2), %s2348_s8, 128, %s2346_s7, %s1215_s27  }
 0x918 PF: > { %s2436_s3 = sld [smem:[#allocation17_spill]]  ;;  %s2437_s15 = sld [smem:[#allocation18_spill]] }
 0x919   : > { %p2439_p13 = scmp.ge.s32.totalorder %s1898_s29, 2 }
 0x91e   : > { %s1241_s16 = sand.u32 1, %s2436_s3   ;;  %p2438_p1 = scmp.ne.s32.totalorder %s2437_s15, 0 }
 0x91f   : > { %s1242_s13 = scalar_lea.sflag [#allocation4], %s1241_s16 }
 0x920   : > { %p1569_p3 = pnand %p2439_p13, %p2438_p1 }
 0x922   : > { %1873 = dma.done.wait (!%p1569_p3), %s1242_s13, 128  }
 0x923   : > { %1875 = vsyncadd (!%p1569_p3), %s1242_s13, 4294967168  ;;  %s27_s29 = sadd.s32 1, %s1898_s29   ;;  %s2440_s24 = smov %s1882_s25 }
 0x924   : > { %p24_p5 = scmp.ge.s32.totalorder %s27_s29, 4   ;;  %s2441_s25 = smov %s1886_s26 }
 0x925   : > { %s2442_s26 = smov %s2123_s20  ;;  %s2443_s27 = smov %s1894_s28 }
 0x926   : > { %s2444_s28 = smov %s2446_s14  ;;  %26 = sbr.rel (!%p24_p5) target bundleno = 14 (0xe), region = 118 }
 0x92d   :  { %1247 = vsyncpa [#allocation3], 1 }
 0x92e   :  { %1249 = vsyncpa [#allocation3 + $0x1], 1 }
 0x92f   :  { %1250 = vsyncpa [#allocation6], 1 }
 0x930   :  { %1252 = vsyncpa [#allocation6 + $0x1], 1 }
 0x931   :  { %1253 = vsyncpa [#allocation9], 1 }
 0x932   :  { %1254 = vsyncpa [#allocation4], 1 }
 0x933   :  { %1256 = vsyncpa [#allocation4 + $0x1], 1 }

</bundles_post_ra>
